<compile_context>
chip_gen: v7x
topology: tpu7x:2x2x1
jax: 0.10.0
libtpu: 0.0.40
codegen_flags: <defaults>
</compile_context>

<pallas_src>
import functools

import jax
import jax.numpy as jnp
import numpy as np
from jax.experimental import pallas as pl
from jax.experimental.pallas import tpu as pltpu

BN_EPS = 1e-5
GIN_EPS = 0.0  # PyG GINConv default eps


def _round_up(v, m):
    return (v + m - 1) // m * m


def _pad_to(a, target_shape):
    pads = [(0, t - s) for s, t in zip(a.shape, target_shape)]
    return jnp.pad(a, pads)


def rgin_kernel(x_ref, adj_ref, ws_ref, bs_ref, w1_ref, b1_ref, g_ref, be_ref,
                w2_ref, b2_ref, out_ref, *, n_real, n_pad):
    """One grid step == one relation.  The output block (constant index_map)
    stays resident in VMEM and accumulates across relations."""
    r = pl.program_id(0)

    @pl.when(r == 0)
    def _():
        # Self-loop linear, done once: bf16 operands on the MXU, f32 accumulate.
        out_ref[...] = (jnp.dot(x_ref[...], ws_ref[...],
                                preferred_element_type=jnp.float32)
                        + bs_ref[...])

    # GIN aggregation; (1+eps)*I is already folded into the adjacency, so
    # h = (A_r + (1+eps)I) @ x directly (padded dst rows of h are exactly 0).
    h = jnp.dot(adj_ref[...], x_ref[...],
                preferred_element_type=jnp.float32).astype(jnp.bfloat16)

    # MLP: Linear -> BatchNorm1d (training-mode stats, f32) -> ReLU -> Linear
    b1 = b1_ref[...]
    z = jnp.dot(h, w1_ref[...], preferred_element_type=jnp.float32) + b1

    # BN statistics over the real node rows only.  Padded rows of z are exactly
    # b1 (h is zero there), so correct the sums analytically (no mask tensor).
    inv_n = jnp.float32(1.0 / n_real)
    if n_pad == n_real:
        mu = jnp.sum(z, axis=0, keepdims=True) * inv_n
        ex2 = jnp.sum(z * z, axis=0, keepdims=True) * inv_n
    else:
        n_extra = jnp.float32(n_pad - n_real)
        mu = (jnp.sum(z, axis=0, keepdims=True) - n_extra * b1) * inv_n
        ex2 = (jnp.sum(z * z, axis=0, keepdims=True) - n_extra * (b1 * b1)) * inv_n
    var = jnp.maximum(ex2 - mu * mu, 0.0)            # clamp one-pass cancellation
    zn = (z - mu) * jax.lax.rsqrt(var + BN_EPS) * g_ref[...] + be_ref[...]
    act = jnp.maximum(zn, 0.0).astype(jnp.bfloat16)

    out_ref[...] += (jnp.dot(act, w2_ref[...],
                             preferred_element_type=jnp.float32)
                     + b2_ref[...])


def build_padded_adj(edge_index, edge_type, num_relations, n_real, n_pad):
    """Scatter-add edges directly into a pre-padded buffer, fold (1+eps)*I on
    the real diagonal, single cast to bf16 (edge counts <= 256 are exact)."""
    adj = jnp.zeros((num_relations, n_pad, n_pad), jnp.float32)
    adj = adj.at[edge_type, edge_index[1], edge_index[0]].add(1.0)
    diag = jnp.arange(n_real)
    adj = adj.at[:, diag, diag].add(1.0 + GIN_EPS)
    return adj.astype(jnp.bfloat16)


def rgin_forward(x, edge_index, edge_type, params, num_relations):
    """x: (N, F_in) f32; edge_index: (2, E) int; edge_type: (E,) int."""
    N, F_in = x.shape
    R = num_relations
    F_out = params["w_self"].shape[1]

    Np = _round_up(max(N, 8), 8)      # sublane-aligned node dim
    Fip = _round_up(F_in, 128)        # lane-dense feature dims
    Fop = _round_up(F_out, 128)

    adj_p = build_padded_adj(edge_index, edge_type, R, N, Np)   # (R, Np, Np) bf16
    x_p = _pad_to(x, (Np, Fip)).astype(jnp.bfloat16)
    ws_p = _pad_to(params["w_self"], (Fip, Fop)).astype(jnp.bfloat16)
    bs_p = _pad_to(params["b_self"], (1, Fop))
    w1_p = _pad_to(params["w1"], (R, Fip, Fop)).astype(jnp.bfloat16)
    b1_p = _pad_to(params["b1"], (R, 1, Fop))
    g_p = _pad_to(params["gamma"], (R, 1, Fop))
    be_p = _pad_to(params["beta"], (R, 1, Fop))
    w2_p = _pad_to(params["w2"], (R, Fop, Fop)).astype(jnp.bfloat16)
    b2_p = _pad_to(params["b2"], (R, 1, Fop))

    # Explicit VMEM budget: per-relation blocks + resident blocks, x2 for the
    # pipeline's double-buffering, + headroom; clamped to 64 MiB (v7x per-TC).
    bf16, f32 = 2, 4
    per_rel = (Np * Np + Fip * Fop + Fop * Fop) * bf16 + 4 * Fop * f32
    resident = (Np * Fip + Fip * Fop) * bf16 + Fop * f32 + Np * Fop * f32
    vmem_limit = int(min(max(2 * (per_rel + resident) + (4 << 20), 8 << 20),
                         64 << 20))

    kernel = pl.pallas_call(
        functools.partial(rgin_kernel, n_real=N, n_pad=Np),
        out_shape=jax.ShapeDtypeStruct((Np, Fop), jnp.float32),
        grid_spec=pltpu.PrefetchScalarGridSpec(
            num_scalar_prefetch=0,
            grid=(R,),                                            # stream relations
            in_specs=[
                pl.BlockSpec((Np, Fip), lambda r: (0, 0)),        # x (resident, bf16)
                pl.BlockSpec((None, Np, Np), lambda r: (r, 0, 0)),    # adj[r] bf16
                pl.BlockSpec((Fip, Fop), lambda r: (0, 0)),       # W_self (bf16)
                pl.BlockSpec((1, Fop), lambda r: (0, 0)),         # b_self (f32)
                pl.BlockSpec((None, Fip, Fop), lambda r: (r, 0, 0)),  # W1[r] bf16
                pl.BlockSpec((None, 1, Fop), lambda r: (r, 0, 0)),    # b1[r] f32
                pl.BlockSpec((None, 1, Fop), lambda r: (r, 0, 0)),    # gamma[r]
                pl.BlockSpec((None, 1, Fop), lambda r: (r, 0, 0)),    # beta[r]
                pl.BlockSpec((None, Fop, Fop), lambda r: (r, 0, 0)),  # W2[r] bf16
                pl.BlockSpec((None, 1, Fop), lambda r: (r, 0, 0)),    # b2[r] f32
            ],
            out_specs=pl.BlockSpec((Np, Fop), lambda r: (0, 0)),  # accumulator
        ),
        compiler_params=pltpu.CompilerParams(
            dimension_semantics=("arbitrary",),   # output accumulates across r
            vmem_limit_bytes=vmem_limit),
    )
    out = kernel(x_p, adj_p, ws_p, bs_p, w1_p, b1_p, g_p, be_p, w2_p, b2_p)
    return out[:N, :F_out]


def ref_forward_mixed(x, adj_ext_bf16, params):
    """Pure-JAX reference with the kernel's precision policy (bf16 matmul
    operands, f32 accumulation/BN stats, (1+eps)I folded into adjacency)."""
    x_bf = x.astype(jnp.bfloat16)
    out = jnp.dot(x_bf, params["w_self"].astype(jnp.bfloat16),
                  preferred_element_type=jnp.float32) + params["b_self"]
    for r in range(adj_ext_bf16.shape[0]):
        h = jnp.dot(adj_ext_bf16[r], x_bf,
                    preferred_element_type=jnp.float32).astype(jnp.bfloat16)
        z = jnp.dot(h, params["w1"][r].astype(jnp.bfloat16),
                    preferred_element_type=jnp.float32) + params["b1"][r]
        mu = jnp.mean(z, axis=0, keepdims=True)
        var = jnp.maximum(jnp.mean(z * z, axis=0, keepdims=True) - mu * mu, 0.0)
        zn = (z - mu) * jax.lax.rsqrt(var + BN_EPS) * params["gamma"][r] + params["beta"][r]
        act = jnp.maximum(zn, 0.0).astype(jnp.bfloat16)
        out = out + jnp.dot(act, params["w2"][r].astype(jnp.bfloat16),
                            preferred_element_type=jnp.float32) + params["b2"][r]
    return out


def ref_forward_f32(x, adj, params):
    """Full-f32 reference replicating the PyTorch forward semantics."""
    out = x @ params["w_self"] + params["b_self"]
    for r in range(adj.shape[0]):
        agg = adj[r] @ x
        h = (1.0 + GIN_EPS) * x + agg
        z = h @ params["w1"][r] + params["b1"][r]
        mu = z.mean(axis=0, keepdims=True)
        var = ((z - mu) ** 2).mean(axis=0, keepdims=True)
        zn = (z - mu) / jnp.sqrt(var + BN_EPS) * params["gamma"][r] + params["beta"][r]
        act = jnp.maximum(zn, 0.0)
        out = out + act @ params["w2"][r] + params["b2"][r]
    return out


def init_params(key, f_in, f_out, num_relations):
    ks = jax.random.split(key, 8)
    scale_in = 1.0 / np.sqrt(f_in)
    scale_out = 1.0 / np.sqrt(f_out)
    return {
        "w_self": jax.random.uniform(ks[0], (f_in, f_out), jnp.float32,
                                     -scale_in, scale_in),
        "b_self": jax.random.uniform(ks[1], (1, f_out), jnp.float32,
                                     -scale_in, scale_in),
        "w1": jax.random.uniform(ks[2], (num_relations, f_in, f_out),
                                 jnp.float32, -scale_in, scale_in),
        "b1": jax.random.uniform(ks[3], (num_relations, 1, f_out),
                                 jnp.float32, -scale_in, scale_in),
        "gamma": jnp.ones((num_relations, 1, f_out), jnp.float32),
        "beta": jnp.zeros((num_relations, 1, f_out), jnp.float32),
        "w2": jax.random.uniform(ks[4], (num_relations, f_out, f_out),
                                 jnp.float32, -scale_out, scale_out),
        "b2": jax.random.uniform(ks[5], (num_relations, 1, f_out),
                                 jnp.float32, -scale_out, scale_out),
    }


if __name__ == "__main__":
    # Small, module-consistent shapes: N nodes, in/out features, R relations, E edges.
    N, F_IN, F_OUT, R, E = 16, 8, 32, 3, 40

    key = jax.random.PRNGKey(0)
    k_x, k_src, k_dst, k_typ, k_p = jax.random.split(key, 5)

    x = jax.random.normal(k_x, (N, F_IN), jnp.float32)
    edge_index = jnp.stack([
        jax.random.randint(k_src, (E,), 0, N),   # source nodes
        jax.random.randint(k_dst, (E,), 0, N),   # target nodes
    ])
    edge_type = jax.random.randint(k_typ, (E,), 0, R)

    params = init_params(k_p, F_IN, F_OUT, R)

    out = jax.block_until_ready(rgin_forward(x, edge_index, edge_type, params, R))

    # Check 1: against a reference using the identical precision policy.
    Np = _round_up(max(N, 8), 8)
    adj_ext = build_padded_adj(edge_index, edge_type, R, N, Np)[:, :N, :N]
    ref_mixed = jax.block_until_ready(ref_forward_mixed(x, adj_ext, params))
    np.testing.assert_allclose(np.asarray(out), np.asarray(ref_mixed),
                               rtol=1e-2, atol=2e-2)

    # Check 2 (gross-error guard): against the full-f32 PyTorch-semantics
    # reference; mixed-precision drift at these shapes is far below 0.5.
    adj_f32 = jnp.zeros((R, N, N), jnp.float32).at[
        edge_type, edge_index[1], edge_index[0]].add(1.0)
    ref_f32 = jax.block_until_ready(ref_forward_f32(x, adj_f32, params))
    max_diff = float(jnp.max(jnp.abs(out - ref_f32)))
    assert max_diff < 0.5, f"f32 reference mismatch: max_diff={max_diff}"

    print("KERNEL_OK")
</pallas_src>

<mosaic_0001>
module attributes {stable_mosaic.version = 11 : i64} {
  func.func @rgin_kernel(%arg0: i32, %arg1: memref<16x128xbf16, #tpu.memory_space<vmem>>, %arg2: memref<1x16x16xbf16, #tpu.memory_space<vmem>>, %arg3: memref<128x128xbf16, #tpu.memory_space<vmem>>, %arg4: memref<1x128xf32, #tpu.memory_space<vmem>>, %arg5: memref<1x128x128xbf16, #tpu.memory_space<vmem>>, %arg6: memref<1x1x128xf32, #tpu.memory_space<vmem>>, %arg7: memref<1x1x128xf32, #tpu.memory_space<vmem>>, %arg8: memref<1x1x128xf32, #tpu.memory_space<vmem>>, %arg9: memref<1x128x128xbf16, #tpu.memory_space<vmem>>, %arg10: memref<1x1x128xf32, #tpu.memory_space<vmem>>, %arg11: memref<16x128xf32, #tpu.memory_space<vmem>>) attributes {dimension_semantics = [#tpu.dimension_semantics<arbitrary>], iteration_bounds = array<i64: 3>, scalar_prefetch = 0 : i64, scratch_operands = 0 : i64, tpu.core_type = #tpu.core_type<tc>, window_params = [{pipeline_mode = #tpu.pipeline_mode<synchronous>, transform_indices = @transform_0, window_bounds = array<i64: 16, 128>}, {transform_indices = @transform_1, window_bounds = array<i64: 1, 16, 16>}, {pipeline_mode = #tpu.pipeline_mode<synchronous>, transform_indices = @transform_2, window_bounds = array<i64: 128, 128>}, {pipeline_mode = #tpu.pipeline_mode<synchronous>, transform_indices = @transform_3, window_bounds = array<i64: 1, 128>}, {transform_indices = @transform_4, window_bounds = array<i64: 1, 128, 128>}, {transform_indices = @transform_5, window_bounds = array<i64: 1, 1, 128>}, {transform_indices = @transform_6, window_bounds = array<i64: 1, 1, 128>}, {transform_indices = @transform_7, window_bounds = array<i64: 1, 1, 128>}, {transform_indices = @transform_8, window_bounds = array<i64: 1, 128, 128>}, {transform_indices = @transform_9, window_bounds = array<i64: 1, 1, 128>}, {pipeline_mode = #tpu.pipeline_mode<synchronous>, transform_indices = @transform_10, window_bounds = array<i64: 16, 128>}]} {
    %c0_i32 = arith.constant 0 : i32
    %0 = arith.cmpi eq, %arg0, %c0_i32 : i32
    %1 = arith.extui %0 : i1 to i32
    %c0_i32_0 = arith.constant 0 : i32
    %2 = arith.cmpi ne, %1, %c0_i32_0 : i32
    scf.if %2 {
      %c0_36 = arith.constant 0 : index
      %c0_37 = arith.constant 0 : index
      %56 = vector.load %arg1[%c0_36, %c0_37] : memref<16x128xbf16, #tpu.memory_space<vmem>>, vector<16x128xbf16>
      %c0_38 = arith.constant 0 : index
      %c0_39 = arith.constant 0 : index
      %57 = vector.load %arg3[%c0_38, %c0_39] : memref<128x128xbf16, #tpu.memory_space<vmem>>, vector<128x128xbf16>
      %cst_40 = arith.constant dense<0.000000e+00> : vector<16x128xf32>
      %58 = tpu.matmul %56, %57, %cst_40 {dimension_numbers = #tpu.dot_dimension_numbers<[1], [0], [0], [1], [0, 0, 1, 1], [], []>} : vector<16x128xbf16>, vector<128x128xbf16>, vector<16x128xf32> -> vector<16x128xf32>
      %c0_41 = arith.constant 0 : index
      %c0_42 = arith.constant 0 : index
      %59 = vector.load %arg4[%c0_41, %c0_42] : memref<1x128xf32, #tpu.memory_space<vmem>>, vector<1x128xf32>
      %60 = vector.broadcast %59 : vector<1x128xf32> to vector<16x128xf32>
      %61 = arith.addf %58, %60 : vector<16x128xf32>
      %c0_43 = arith.constant 0 : index
      %c0_44 = arith.constant 0 : index
      %62 = vector.load %arg11[%c0_43, %c0_44] : memref<16x128xf32, #tpu.memory_space<vmem>>, vector<16x128xf32>
      tpu.vector_store %arg11[%c0_43, %c0_44], %61 {strides = array<i32>} : memref<16x128xf32, #tpu.memory_space<vmem>>, vector<16x128xf32>,
    } else {
    }
    %c0 = arith.constant 0 : index
    %c0_1 = arith.constant 0 : index
    %c0_2 = arith.constant 0 : index
    %3 = vector.load %arg2[%c0, %c0_1, %c0_2] : memref<1x16x16xbf16, #tpu.memory_space<vmem>>, vector<1x16x16xbf16>
    %4 = vector.shape_cast %3 : vector<1x16x16xbf16> to vector<16x16xbf16>
    %c0_3 = arith.constant 0 : index
    %c0_4 = arith.constant 0 : index
    %5 = vector.load %arg1[%c0_3, %c0_4] : memref<16x128xbf16, #tpu.memory_space<vmem>>, vector<16x128xbf16>
    %cst = arith.constant dense<0.000000e+00> : vector<16x128xf32>
    %6 = tpu.matmul %4, %5, %cst {dimension_numbers = #tpu.dot_dimension_numbers<[1], [0], [0], [1], [0, 0, 1, 1], [], []>} : vector<16x16xbf16>, vector<16x128xbf16>, vector<16x128xf32> -> vector<16x128xf32>
    %7 = arith.truncf %6 : vector<16x128xf32> to vector<16x128xbf16>
    %c0_5 = arith.constant 0 : index
    %c0_6 = arith.constant 0 : index
    %c0_7 = arith.constant 0 : index
    %8 = vector.load %arg6[%c0_5, %c0_6, %c0_7] : memref<1x1x128xf32, #tpu.memory_space<vmem>>, vector<1x1x128xf32>
    %9 = vector.shape_cast %8 : vector<1x1x128xf32> to vector<1x128xf32>
    %c0_8 = arith.constant 0 : index
    %c0_9 = arith.constant 0 : index
    %c0_10 = arith.constant 0 : index
    %10 = vector.load %arg5[%c0_8, %c0_9, %c0_10] : memref<1x128x128xbf16, #tpu.memory_space<vmem>>, vector<1x128x128xbf16>
    %11 = vector.shape_cast %10 : vector<1x128x128xbf16> to vector<128x128xbf16>
    %cst_11 = arith.constant dense<0.000000e+00> : vector<16x128xf32>
    %12 = tpu.matmul %7, %11, %cst_11 {dimension_numbers = #tpu.dot_dimension_numbers<[1], [0], [0], [1], [0, 0, 1, 1], [], []>} : vector<16x128xbf16>, vector<128x128xbf16>, vector<16x128xf32> -> vector<16x128xf32>
    %13 = vector.broadcast %9 : vector<1x128xf32> to vector<16x128xf32>
    %14 = arith.addf %12, %13 : vector<16x128xf32>
    %cst_12 = arith.constant dense<0.000000e+00> : vector<128xf32>
    %15 = vector.multi_reduction <add>, %14, %cst_12 [0] : vector<16x128xf32> to vector<128xf32>
    %16 = vector.shape_cast %15 : vector<128xf32> to vector<1x128xf32>
    %cst_13 = arith.constant 6.250000e-02 : f32
    %17 = vector.broadcast %cst_13 : f32 to vector<1x128xf32>
    %18 = arith.mulf %16, %17 : vector<1x128xf32>
    %19 = arith.mulf %14, %14 : vector<16x128xf32>
    %cst_14 = arith.constant dense<0.000000e+00> : vector<128xf32>
    %20 = vector.multi_reduction <add>, %19, %cst_14 [0] : vector<16x128xf32> to vector<128xf32>
    %21 = vector.shape_cast %20 : vector<128xf32> to vector<1x128xf32>
    %cst_15 = arith.constant 6.250000e-02 : f32
    %22 = vector.broadcast %cst_15 : f32 to vector<1x128xf32>
    %23 = arith.mulf %21, %22 : vector<1x128xf32>
    %24 = arith.mulf %18, %18 : vector<1x128xf32>
    %25 = arith.subf %23, %24 : vector<1x128xf32>
    %cst_16 = arith.constant 0.000000e+00 : f32
    %26 = vector.broadcast %cst_16 : f32 to vector<1x128xf32>
    %27 = arith.maximumf %25, %26 : vector<1x128xf32>
    %28 = vector.broadcast %18 : vector<1x128xf32> to vector<16x128xf32>
    %29 = arith.subf %14, %28 : vector<16x128xf32>
    %cst_17 = arith.constant 9.99999974E-6 : f32
    %30 = vector.broadcast %cst_17 : f32 to vector<1x128xf32>
    %31 = arith.addf %27, %30 : vector<1x128xf32>
    %32 = math.rsqrt %31 : vector<1x128xf32>
    %33 = vector.broadcast %32 : vector<1x128xf32> to vector<16x128xf32>
    %34 = arith.mulf %29, %33 : vector<16x128xf32>
    %c0_18 = arith.constant 0 : index
    %c0_19 = arith.constant 0 : index
    %c0_20 = arith.constant 0 : index
    %35 = vector.load %arg7[%c0_18, %c0_19, %c0_20] : memref<1x1x128xf32, #tpu.memory_space<vmem>>, vector<1x1x128xf32>
    %36 = vector.shape_cast %35 : vector<1x1x128xf32> to vector<1x128xf32>
    %37 = vector.broadcast %36 : vector<1x128xf32> to vector<16x128xf32>
    %38 = arith.mulf %34, %37 : vector<16x128xf32>
    %c0_21 = arith.constant 0 : index
    %c0_22 = arith.constant 0 : index
    %c0_23 = arith.constant 0 : index
    %39 = vector.load %arg8[%c0_21, %c0_22, %c0_23] : memref<1x1x128xf32, #tpu.memory_space<vmem>>, vector<1x1x128xf32>
    %40 = vector.shape_cast %39 : vector<1x1x128xf32> to vector<1x128xf32>
    %41 = vector.broadcast %40 : vector<1x128xf32> to vector<16x128xf32>
    %42 = arith.addf %38, %41 : vector<16x128xf32>
    %cst_24 = arith.constant 0.000000e+00 : f32
    %43 = vector.broadcast %cst_24 : f32 to vector<16x128xf32>
    %44 = arith.maximumf %42, %43 : vector<16x128xf32>
    %45 = arith.truncf %44 : vector<16x128xf32> to vector<16x128xbf16>
    %c0_25 = arith.constant 0 : index
    %c0_26 = arith.constant 0 : index
    %46 = vector.load %arg11[%c0_25, %c0_26] : memref<16x128xf32, #tpu.memory_space<vmem>>, vector<16x128xf32>
    %c0_27 = arith.constant 0 : index
    %c0_28 = arith.constant 0 : index
    %c0_29 = arith.constant 0 : index
    %47 = vector.load %arg9[%c0_27, %c0_28, %c0_29] : memref<1x128x128xbf16, #tpu.memory_space<vmem>>, vector<1x128x128xbf16>
    %48 = vector.shape_cast %47 : vector<1x128x128xbf16> to vector<128x128xbf16>
    %cst_30 = arith.constant dense<0.000000e+00> : vector<16x128xf32>
    %49 = tpu.matmul %45, %48, %cst_30 {dimension_numbers = #tpu.dot_dimension_numbers<[1], [0], [0], [1], [0, 0, 1, 1], [], []>} : vector<16x128xbf16>, vector<128x128xbf16>, vector<16x128xf32> -> vector<16x128xf32>
    %c0_31 = arith.constant 0 : index
    %c0_32 = arith.constant 0 : index
    %c0_33 = arith.constant 0 : index
    %50 = vector.load %arg10[%c0_31, %c0_32, %c0_33] : memref<1x1x128xf32, #tpu.memory_space<vmem>>, vector<1x1x128xf32>
    %51 = vector.shape_cast %50 : vector<1x1x128xf32> to vector<1x128xf32>
    %52 = vector.broadcast %51 : vector<1x128xf32> to vector<16x128xf32>
    %53 = arith.addf %49, %52 : vector<16x128xf32>
    %54 = arith.addf %46, %53 : vector<16x128xf32>
    %c0_34 = arith.constant 0 : index
    %c0_35 = arith.constant 0 : index
    %55 = vector.load %arg11[%c0_34, %c0_35] : memref<16x128xf32, #tpu.memory_space<vmem>>, vector<16x128xf32>
    tpu.vector_store %arg11[%c0_34, %c0_35], %54 {strides = array<i32>} : memref<16x128xf32, #tpu.memory_space<vmem>>, vector<16x128xf32>,
    return
  }
  func.func @transform_0(%arg0: i32) -> (i32, i32) {
    %c0_i32 = arith.constant 0 : i32
    %c0_i32_0 = arith.constant 0 : i32
    %c0_i32_1 = arith.constant 0 : i32
    return %c0_i32, %c0_i32_0 : i32, i32
  }
  func.func @transform_1(%arg0: i32) -> (i32, i32, i32) {
    %c0_i32 = arith.constant 0 : i32
    %c0_i32_0 = arith.constant 0 : i32
    %c0_i32_1 = arith.constant 0 : i32
    return %arg0, %c0_i32, %c0_i32_0 : i32, i32, i32
  }
  func.func @transform_2(%arg0: i32) -> (i32, i32) {
    %c0_i32 = arith.constant 0 : i32
    %c0_i32_0 = arith.constant 0 : i32
    %c0_i32_1 = arith.constant 0 : i32
    return %c0_i32, %c0_i32_0 : i32, i32
  }
  func.func @transform_3(%arg0: i32) -> (i32, i32) {
    %c0_i32 = arith.constant 0 : i32
    %c0_i32_0 = arith.constant 0 : i32
    %c0_i32_1 = arith.constant 0 : i32
    return %c0_i32, %c0_i32_0 : i32, i32
  }
  func.func @transform_4(%arg0: i32) -> (i32, i32, i32) {
    %c0_i32 = arith.constant 0 : i32
    %c0_i32_0 = arith.constant 0 : i32
    %c0_i32_1 = arith.constant 0 : i32
    return %arg0, %c0_i32, %c0_i32_0 : i32, i32, i32
  }
  func.func @transform_5(%arg0: i32) -> (i32, i32, i32) {
    %c0_i32 = arith.constant 0 : i32
    %c0_i32_0 = arith.constant 0 : i32
    %c0_i32_1 = arith.constant 0 : i32
    return %arg0, %c0_i32, %c0_i32_0 : i32, i32, i32
  }
  func.func @transform_6(%arg0: i32) -> (i32, i32, i32) {
    %c0_i32 = arith.constant 0 : i32
    %c0_i32_0 = arith.constant 0 : i32
    %c0_i32_1 = arith.constant 0 : i32
    return %arg0, %c0_i32, %c0_i32_0 : i32, i32, i32
  }
  func.func @transform_7(%arg0: i32) -> (i32, i32, i32) {
    %c0_i32 = arith.constant 0 : i32
    %c0_i32_0 = arith.constant 0 : i32
    %c0_i32_1 = arith.constant 0 : i32
    return %arg0, %c0_i32, %c0_i32_0 : i32, i32, i32
  }
  func.func @transform_8(%arg0: i32) -> (i32, i32, i32) {
    %c0_i32 = arith.constant 0 : i32
    %c0_i32_0 = arith.constant 0 : i32
    %c0_i32_1 = arith.constant 0 : i32
    return %arg0, %c0_i32, %c0_i32_0 : i32, i32, i32
  }
  func.func @transform_9(%arg0: i32) -> (i32, i32, i32) {
    %c0_i32 = arith.constant 0 : i32
    %c0_i32_0 = arith.constant 0 : i32
    %c0_i32_1 = arith.constant 0 : i32
    return %arg0, %c0_i32, %c0_i32_0 : i32, i32, i32
  }
  func.func @transform_10(%arg0: i32) -> (i32, i32) {
    %c0_i32 = arith.constant 0 : i32
    %c0_i32_0 = arith.constant 0 : i32
    %c0_i32_1 = arith.constant 0 : i32
    return %c0_i32, %c0_i32_0 : i32, i32
  }
}

</mosaic_0001>

<bundles_post_ra>
// kernel: tpu_custom_call.1
= control target key start
LH: loop header
LB: loop body
LE: loop exit
PB: predicated region body
PF: predicated region fallthrough
CT: control target
= control target key end

     0   :  { %s2076_s0 = inlined_call_operand.hbm [shape: bf16[16,128], index: 0, kind: input, shape index: {}]   ;;  %s2077_s1 = inlined_call_operand.hbm [shape: bf16[3,16,16], index: 1, kind: input, shape index: {}]   ;;  %s2078_s2 = inlined_call_operand.hbm [shape: bf16[128,128], index: 2, kind: input, shape index: {}]   ;;  %s2079_s3 = inlined_call_operand.vmem [shape: f32[1,128], index: 3, kind: input, shape index: {}]   ;;  %s2080_s4 = inlined_call_operand.hbm [shape: bf16[3,128,128], index: 4, kind: input, shape index: {}]   ;;  %s2081_s5 = inlined_call_operand.vmem [shape: f32[3,1,128], index: 5, kind: input, shape index: {}]   ;;  %s2082_s6 = inlined_call_operand.vmem [shape: f32[3,1,128], index: 6, kind: input, shape index: {}]   ;;  %s2083_s7 = inlined_call_operand.vmem [shape: f32[3,1,128], index: 7, kind: input, shape index: {}]   ;;  %s2084_s8 = inlined_call_operand.hbm [shape: bf16[3,128,128], index: 8, kind: input, shape index: {}]   ;;  %s2085_s9 = inlined_call_operand.vmem [shape: f32[3,1,128], index: 9, kind: input, shape index: {}]   ;;  %s2086_s10 = inlined_call_operand.hbm [shape: f32[16,128], index: 10, kind: output, shape index: {}]  }
   0x1   :  { %2107 = sst [smem:[#allocation20_spill]] %s2078_s2 }
   0x2   :  { %2108 = sst [smem:[#allocation21_spill]] %s2079_s3 }
   0x3   :  { %2109 = sst [smem:[#allocation22_spill]] %s2080_s4 }
   0x4   :  { %2110 = sst [smem:[#allocation23_spill]] %s2081_s5 }
   0x5   :  { %2111 = sst [smem:[#allocation24_spill]] %s2082_s6 }
   0x6   :  { %2112 = sst [smem:[#allocation25_spill]] %s2083_s7 }
   0x7   :  { %2113 = sst [smem:[#allocation26_spill]] %s2085_s9 }
   0x8   :  { %2114 = sst [smem:[#allocation27_spill]] %s2086_s10 }
   0x9   :  { %15 = vsyncpa [#allocation3], 0 }
   0xa   :  { %16 = vsyncpa [#allocation6], 0 }
   0xb   :  { %18 = vsyncpa [#allocation6 + $0x1], 0 }
   0xc   :  { %19 = vsyncpa [#allocation9], 0 }
   0xd   :  { %21 = vsyncpa [#allocation9 + $0x1], 0 }
   0xe   :  { %22 = vsyncpa [#allocation4], 0  ;;  %s1716_s13 = smov 0   ;;  %s1718_s14 = smov 0  }
   0xf   :  { %s1720_s15 = smov 0   ;;  %s1722_s16 = smov 0  }
  0x10 LB: > { %2115 = sst [smem:[#allocation17_spill]] %s1641_s15  ;;  %s1735_s17 = sadd.s32 4294967295, %s1645_s16   ;;  %s1645_s16 = sphi %s1722_s16, %s2151_s16   ;;  %s1641_s15 = sphi %s1720_s15, %s2153_s15   ;;  %s1637_s14 = sphi %s1718_s14, %s2155_s14   ;;  %s1633_s13 = sphi %s1716_s13, %s2154_s13  }
  0x11   : > { %p69_p0 = scmp.ne.s32.totalorder %s1637_s14, %s1633_s13  ;;  %p2087_p1 = scmp.eq.s32.totalorder %s1735_s17, 0 }
  0x12   : > { %p1154_p2 = scmp.ge.s32.totalorder %s1645_s16, 1  ;;  %p299_p3 = scmp.lt.s32.totalorder %s1645_s16, 4 }
  0x13   : > { %p1744_p5 = por %p2087_p1, %p69_p0  ;;  %s1647_s20 = smov [#allocation7]  }
  0x14   : > { %p1748_p6 = pnand %p1154_p2, %p299_p3  ;;  %s324_s21 = sshll.u32 %s1647_s20, 4  ;;  %s325_s21 = int_to_ptr.vmem [resolvable:$true] %s324_s21 }
  0x15   : > { %s2116_s18 = scalar_select %p1744_p5, 1, 0 }
  0x16   : > { %s2117_s19 = scalar_select %p1748_p6, 1, 0 }
  0x17   : > { %p1327_p7 = pneg %p1748_p6  ;;  %s1761_s23 = sadd.s32 1, %s1645_s16  }
  0x18   : > { %2119 = sst [smem:[#allocation18_spill]] %s1761_s23  ;;  %s56_s24 = sadd.s32 1, %s1641_s15 }
  0x19   : > { %p1756_p8 = pnand %p1327_p7, %p2087_p1  ;;  %s53_s25 = ssub.s32 %s1645_s16, %s1761_s23 }
  0x1a   : > { %s2120_s2 = sld [smem:[#allocation20_spill]] }
  0x1b   : > { %s2118_s22 = scalar_select %p1756_p8, 1, 0 }
  0x1c   : > { %p2097_p10 = pneg %p1756_p8 }
  0x20   : > { %s1423_s28 = scalar_lea.hbm %s2120_s2, 1024 }
  0x21   : > { %p1424_p9 = scmp.ne.s32.totalorder %s2120_s2, %s1423_s28  ;;  %p1430_p13 = scmp.lt.u32.totalorder %s1423_s28, %s2120_s2 }
  0x23   : > { %p1426_p11 = pnand %p2097_p10, %p1424_p9 }
  0x25   : > { %p1427_p12 = pneg %p1426_p11 }
  0x27   : > { %p1432_p0 = pnand %p1430_p13, %p1427_p12 }
  0x29   : > { %1435 = shalt.err (!%p1432_p0)
}
  0x2a   : > { %s1436_s13 = scalar_lea.vmem %s325_s21, 1024  ;;  %p1444_p4 = scmp.lt.s32.totalorder %s325_s21, %s325_s21 }
  0x2b   : > { %p1437_p2 = scmp.ne.s32.totalorder %s325_s21, %s1436_s13  ;;  %p1445_p1 = scmp.lt.s32.totalorder %s1436_s13, %s1436_s13 }
  0x2d   : > { %p1439_p3 = pnand %p1437_p2, %p2097_p10  ;;  %p1446_p5 = por %p1445_p1, %p1444_p4 }
  0x2f   : > { %p1440_p7 = pneg %p1439_p3 }
  0x31   : > { %p1447_p6 = pnand %p1446_p5, %p1440_p7 }
  0x33   : > { %1450 = shalt.err (!%p1447_p6)
}
  0x34   : > { %s2090_s20 = smov 64   ;;  %s2092_s26 = smov 4  }
  0x35   : > { %1333 = dma.hbm_to_vmem [thread:$0]  (!%p1756_p8), %s2120_s2, 1024, %s325_s21, [#allocation6], %s2090_s20, %s2090_s20, %s2092_s26  }
  0x36   : > { %p54_p1 = scmp.eq.s32.totalorder %s53_s25, 0  ;;  %p63_p4 = scmp.ne.s32.totalorder %s1641_s15, %s1637_s14 }
  0x37   : > { %p64_p5 = scmp.eq.s32.totalorder %s1645_s16, 0  ;;  %p1346_p6 = scmp.lt.s32.totalorder %s1645_s16, 3 }
  0x38   : > { %s1796_s29 = scalar_select %p54_p1, %s1641_s15, %s56_s24  }
  0x39   : > { %p65_p9 = por %p64_p5, %p63_p4  ;;  %s2096_s30 = sand.u32 1, %s1645_s16  }
  0x3a   : > { %2121 = sst [smem:[#allocation19_spill]] %s1796_s29  ;;  %s343_s11 = sand.u32 1, %s1641_s15  }
  0x3b   : > { %s1800_s12 = sshll.u32 %s343_s11, 3  ;;  %p1802_p11 = pnand %p1346_p6, %p65_p9 }
  0x3c   : > { %s1806_s27 = sshll.u32 %s343_s11, 6  ;;  %s2094_s21 = sshll.u32 %s1645_s16, 10 }
  0x3d   : > { %s2122_s13 = scalar_select %p1802_p11, 1, 0 }
  0x3e   : > { %s366_s25 = scalar_lea.vmem [#allocation8], %s1806_s27  ;;  %s2123_s4 = sld [smem:[#allocation22_spill]] }
  0x3f   : > { %s373_s28 = sshll.u32 %s366_s25, 4  ;;  %s1821_s2 = scalar_lea.sflag [#allocation9], %s2096_s30  ;;  %s1817_s28 = int_to_ptr.vmem [resolvable:$true] %s373_s28 }
  0x40   : > { %p1827_p13 = pneg %p1802_p11 }
  0x42   : > { %s2124_s25 = scalar_select %p1827_p13, 1, 0 }
  0x44   : > { %s1815_s26 = scalar_lea.hbm %s2123_s4, %s2094_s21  ;;  %s1456_s21 = scalar_lea.hbm %s2123_s4, 3072 }
  0x45   : > { %s1451_s11 = scalar_lea.hbm %s1815_s26, 1024  ;;  %p1457_p3 = scmp.lt.u32.totalorder %s1815_s26, %s2123_s4 }
  0x46   : > { %p1452_p12 = scmp.ne.s32.totalorder %s1815_s26, %s1451_s11  ;;  %p1458_p7 = scmp.lt.u32.totalorder %s1456_s21, %s1451_s11 }
  0x47   : > { %p1460_p4 = scmp.lt.u32.totalorder %s1451_s11, %s1815_s26 }
  0x48   : > { %p1454_p0 = pnand %p1827_p13, %p1452_p12  ;;  %p1459_p1 = por %p1458_p7, %p1457_p3 }
  0x4a   : > { %p1455_p2 = pneg %p1454_p0  ;;  %p1461_p5 = por %p1460_p4, %p1459_p1 }
  0x4c   : > { %p1462_p6 = pnand %p1461_p5, %p1455_p2 }
  0x4e   : > { %1465 = shalt.err (!%p1462_p6)
}
  0x4f   : > { %s1466_s30 = scalar_lea.vmem %s1817_s28, 1024  ;;  %s1650_s20 = smov [#allocation8]  }
  0x50   : > { %p1467_p9 = scmp.ne.s32.totalorder %s1817_s28, %s1466_s30  ;;  %s1471_s24 = sshll.u32 %s1650_s20, 4  ;;  %s1472_s24 = int_to_ptr.vmem [resolvable:$false] %s1471_s24 }
  0x51   : > { %s1473_s15 = scalar_lea.vmem %s1472_s24, 2048  ;;  %p1474_p10 = scmp.lt.s32.totalorder %s1817_s28, %s1472_s24 }
  0x52   : > { %p1469_p12 = pnand %p1467_p9, %p1827_p13  ;;  %p1475_p8 = scmp.lt.s32.totalorder %s1473_s15, %s1466_s30 }
  0x54   : > { %p1470_p0 = pneg %p1469_p12  ;;  %p1476_p3 = por %p1475_p8, %p1474_p10 }
  0x56   : > { %p1477_p7 = pnand %p1476_p3, %p1470_p0 }
  0x58   : > { %1480 = shalt.err (!%p1477_p7)
}
  0x59   : > { %s2125_s29 = smov 4   ;;  %s2126_s21 = smov 64  }
  0x5a   : > { %1340 = dma.hbm_to_vmem [thread:$0]  (!%p1802_p11), %s1815_s26, 1024, %s1817_s28, %s1821_s2, %s2126_s21, %s2126_s21, %s2125_s29  }
  0x5b   : > { %s2127_s11 = sshll.u32 %s1645_s16, 10  ;;  %s405_s24 = scalar_lea.vmem [#allocation10], %s1806_s27 }
  0x5c   : > { %s1859_s30 = scalar_lea.hbm %s2084_s8, %s2127_s11  ;;  %s412_s15 = sshll.u32 %s405_s24, 4  ;;  %s1862_s15 = int_to_ptr.vmem [resolvable:$true] %s412_s15 }
  0x5d   : > { %s1651_s23 = smov [#allocation2]   ;;  %s1481_s7 = scalar_lea.hbm %s2076_s0, 128 }
  0x5e   : > { %s311_s10 = sshll.u32 %s1651_s23, 4  ;;  %p1482_p8 = scmp.ne.s32.totalorder %s2076_s0, %s1481_s7  ;;  %s312_s10 = int_to_ptr.vmem [resolvable:$true] %s311_s10 }
  0x5f   : > { %p2128_p10 = scmp.ne.s32.totalorder %s2118_s22, 0  ;;  %p1488_p5 = scmp.lt.u32.totalorder %s1481_s7, %s2076_s0 }
  0x61   : > { %p2129_p2 = pneg %p2128_p10 }
  0x63   : > { %p1484_p1 = pnand %p1482_p8, %p2129_p2 }
  0x65   : > { %p1485_p4 = pneg %p1484_p1 }
  0x67   : > { %p1490_p6 = pnand %p1488_p5, %p1485_p4 }
  0x69   : > { %1493 = shalt.err (!%p1490_p6)
}
  0x6a   : > { %s1494_s23 = scalar_lea.vmem %s312_s10, 128  ;;  %p2130_p12 = pmov %p2129_p2 }
  0x6b   : > { %p1495_p9 = scmp.ne.s32.totalorder %s312_s10, %s1494_s23  ;;  %p1502_p7 = scmp.lt.s32.totalorder %s312_s10, %s312_s10 }
  0x6c   : > { %p1503_p11 = scmp.lt.s32.totalorder %s1494_s23, %s1494_s23 }
  0x6d   : > { %p1497_p0 = pnand %p1495_p9, %p2130_p12 }
  0x6e   : > { %p1504_p13 = por %p1503_p11, %p1502_p7 }
  0x6f   : > { %p1498_p3 = pneg %p1497_p0 }
  0x71   : > { %p1505_p2 = pnand %p1504_p13, %p1498_p3 }
  0x73   : > { %1508 = shalt.err (!%p1505_p2)
}
  0x74   : > { %1330 = dma.hbm_to_vmem [thread:$0]  (!%p2128_p10), %s2076_s0, 128, %s312_s10, [#allocation3], %s2126_s21, %s2126_s21, %s2125_s29  }
  0x75   : > { %s1211_s6 = sshll.u32 %s1645_s16, 7  ;;  %s345_s7 = scalar_lea.vmem [#allocation5], %s1800_s12 }
  0x76   : > { %s352_s9 = sshll.u32 %s345_s7, 4  ;;  %s1892_s11 = scalar_lea.hbm %s2077_s1, %s1211_s6  ;;  %s1894_s9 = int_to_ptr.vmem [resolvable:$true] %s352_s9 }
  0x77   : > { %s2131_s22 = sand.u32 1, %s1645_s16   ;;  %s1509_s24 = scalar_lea.hbm %s1892_s11, 128 }
  0x78   : > { %s1898_s20 = scalar_lea.sflag [#allocation6], %s2131_s22  ;;  %p1510_p11 = scmp.ne.s32.totalorder %s1892_s11, %s1509_s24 }
  0x79   : > { %p2132_p13 = scmp.ne.s32.totalorder %s2124_s25, 0  ;;  %s1514_s4 = scalar_lea.hbm %s2077_s1, 384 }
  0x7a   : > { %p1515_p1 = scmp.lt.u32.totalorder %s1892_s11, %s2077_s1  ;;  %p1516_p4 = scmp.lt.u32.totalorder %s1514_s4, %s1509_s24 }
  0x7b   : > { %p1512_p8 = pnand %p1510_p11, %p2132_p13  ;;  %p1518_p6 = scmp.lt.u32.totalorder %s1509_s24, %s1892_s11 }
  0x7c   : > { %p1517_p5 = por %p1516_p4, %p1515_p1 }
  0x7d   : > { %p1513_p10 = pneg %p1512_p8 }
  0x7e   : > { %p1519_p9 = por %p1518_p6, %p1517_p5 }
  0x80   : > { %p1520_p12 = pnand %p1519_p9, %p1513_p10 }
  0x82   : > { %1523 = shalt.err (!%p1520_p12)
}
  0x83   : > { %s1524_s16 = scalar_lea.vmem %s1894_s9, 128  ;;  %s1652_s3 = smov [#allocation5]  }
  0x84   : > { %p1525_p0 = scmp.ne.s32.totalorder %s1894_s9, %s1524_s16  ;;  %s1529_s5 = sshll.u32 %s1652_s3, 4  ;;  %s1530_s5 = int_to_ptr.vmem [resolvable:$false] %s1529_s5 }
  0x85   : > { %s1531_s6 = scalar_lea.vmem %s1530_s5, 256  ;;  %p1532_p2 = scmp.lt.s32.totalorder %s1894_s9, %s1530_s5 }
  0x86   : > { %p1527_p3 = pnand %p1525_p0, %p2132_p13  ;;  %p1533_p11 = scmp.lt.s32.totalorder %s1531_s6, %s1524_s16 }
  0x88   : > { %p1528_p7 = pneg %p1527_p3  ;;  %p1534_p8 = por %p1533_p11, %p1532_p2 }
  0x8a   : > { %p1535_p1 = pnand %p1534_p8, %p1528_p7 }
  0x8c   : > { %1538 = shalt.err (!%p1535_p1)
}
  0x8d   : > { %p2133_p10 = scmp.ne.s32.totalorder %s2122_s13, 0  ;;  %s1539_s7 = scalar_lea.hbm %s1859_s30, 1024 }
  0x8e   : > { %p1540_p4 = scmp.ne.s32.totalorder %s1859_s30, %s1539_s7  ;;  %s1544_s22 = scalar_lea.hbm %s2084_s8, 3072 }
  0x8f   : > { %1337 = dma.hbm_to_vmem [thread:$0]  (!%p2133_p10), %s1892_s11, 128, %s1894_s9, %s1898_s20, %s2126_s21, %s2126_s21, %s2125_s29  }
  0x90   : > { %p1542_p5 = pnand %p1540_p4, %p2132_p13  ;;  %p1545_p9 = scmp.lt.u32.totalorder %s1859_s30, %s2084_s8 }
  0x91   : > { %p1546_p12 = scmp.lt.u32.totalorder %s1544_s22, %s1539_s7  ;;  %p1548_p3 = scmp.lt.u32.totalorder %s1539_s7, %s1859_s30 }
  0x92   : > { %p1543_p6 = pneg %p1542_p5 }
  0x93   : > { %p1547_p0 = por %p1546_p12, %p1545_p9 }
  0x95   : > { %p1549_p7 = por %p1548_p3, %p1547_p0 }
  0x97   : > { %p1550_p2 = pnand %p1549_p7, %p1543_p6 }
  0x99   : > { %1553 = shalt.err (!%p1550_p2)
}
  0x9a   : > { %s1554_s9 = scalar_lea.vmem %s1862_s15, 1024  ;;  %s1653_s11 = smov [#allocation10]  }
  0x9b   : > { %p1555_p11 = scmp.ne.s32.totalorder %s1862_s15, %s1554_s9  ;;  %s1559_s20 = sshll.u32 %s1653_s11, 4  ;;  %s1560_s20 = int_to_ptr.vmem [resolvable:$false] %s1559_s20 }
  0x9c   : > { %s1561_s12 = scalar_lea.vmem %s1560_s20, 2048  ;;  %p1562_p4 = scmp.lt.s32.totalorder %s1862_s15, %s1560_s20 }
  0x9d   : > { %p1557_p8 = pnand %p1555_p11, %p2132_p13  ;;  %p1563_p5 = scmp.lt.s32.totalorder %s1561_s12, %s1554_s9 }
  0x9f   : > { %p1558_p1 = pneg %p1557_p8  ;;  %p1564_p9 = por %p1563_p5, %p1562_p4 }
  0xa1   : > { %p1565_p12 = pnand %p1564_p9, %p1558_p1 }
  0xa3   : > { %1568 = shalt.err (!%p1565_p12)
}
  0xa4   : > { %1343 = dma.hbm_to_vmem [thread:$0]  (!%p2133_p10), %s1859_s30, 1024, %s1862_s15, %s1821_s2, %s2126_s21, %s2126_s21, %s2125_s29  }
  0xa5   : > { %p2134_p13 = scmp.ne.s32.totalorder %s2117_s19, 0 }
  0xa6   : > { %p2135_p6 = scmp.eq.s32.totalorder (!%p2134_p13), %s1735_s17, 0 }
  0xa7   : > { %430 = sbr.rel (%p2134_p13) target bundleno = 1163 (0x48b), region = 60 }
  0xae   : > { %1612 = dma.done.wait (%p2135_p6), [#allocation3], 128   ;;  %p2136_p0 = pmov %p2135_p6 }
  0xaf   : > { %s436_s13 = sand.u32 1, %s1735_s17   ;;  %s438_s25 = sand.u32 1, %s1637_s14  }
  0xb0   : > { %1614 = vsyncadd (%p2136_p0), [#allocation3], 4294967168  ;;  %s1958_s4 = sshll.u32 %s438_s25, 3  ;;  %s437_s26 = scalar_lea.sflag [#allocation6], %s436_s13 }
  0xb1   : > { %s440_s23 = scalar_lea.vmem [#allocation5], %s1958_s4  ;;  %p2137_p10 = scmp.ne.s32.totalorder %s2116_s18, 0 }
  0xb3   : > { %1616 = dma.done.wait (%p2137_p10), %s437_s26, 128  }
  0xb4   : > { %1618 = vsyncadd (%p2137_p10), %s437_s26, 4294967168  ;;  %p2138_p3 = pmov %p2136_p0 }
  0xb5   : > { %p2139_p7 = pmov %p2136_p0 }
  0xb6   : > { %1620 = dma.done.wait (%p2138_p3), [#allocation6], 1024  }
  0xb7   : > { %1622 = vsyncadd (%p2139_p7), [#allocation6], 4294966272  ;;  %s1171_s2 = sshll.u32 %s438_s25, 6  ;;  %s450_s19 = scalar_lea.sflag [#allocation9], %s436_s13 }
  0xb8   : > { %s1969_s29 = scalar_lea.vmem [#allocation8], %s1171_s2 }
  0xb9   : > { %1624 = dma.done.wait (%p2137_p10), %s450_s19, 2048  }
  0xba   : > { %1626 = vsyncadd (%p2137_p10), %s450_s19, 4294965248  ;;  %p516_p2 = scmp.lt.s32.totalorder %s1735_s17, 2  ;;  %s2140_s16 = sld [smem:[#allocation23_spill]] }
  0xbb   : > { %s2141_s7 = sld [smem:[#allocation24_spill]]  ;;  %s2142_s22 = sld [smem:[#allocation25_spill]] }
  0xbc   : > { %s1977_s21 = scalar_select %p516_p2, %s1735_s17, 2 }
  0xbd   : > { %s2143_s11 = sld [smem:[#allocation26_spill]]  ;;  %s1995_s12 = scalar_lea.vmem [#allocation10], %s1171_s2 }
  0xbe   : > { %p2144_p11 = scmp.ne.s32.totalorder %s1735_s17, 0 }
  0xbf   : > { %v1394_v0 = vld [vmem:[#allocation7] sm:$0xff] (!%p2144_p11)   ;;  %v1654_v1 = vmov (!%p2144_p11), 0.0   ;;  %v1395_v2 = vld [vmem:[#allocation7 + $0x8] sm:$0xff] (!%p2144_p11)   ;;  %vm1655_vm0 = vmmov (!%p2144_p11), 0   ;;  %v1396_v3 = vld [vmem:[#allocation7 + $0x10] sm:$0xff] (!%p2144_p11)   ;;  %s2145_s26 = sld [smem:[#allocation21_spill]] (!%p2144_p11) }
  0xc0   : > { %s518_s3 = scalar_lea.vmem %s2140_s16, %s1977_s21  ;;  %532 = sbr.rel (%p2144_p11) target bundleno = 441 (0x1b9), region = 84  ;;  %1243 = vmatprep.subr.bf16.mxu0 (!%p2144_p11), %v1654_v1  ;;  %1259 = vmatprep.mubr.msk.bf16.mxu0 (!%p2144_p11), %vm1655_vm0, %v1654_v1  ;;  %v1397_v4 = vld [vmem:[#allocation7 + $0x18] sm:$0xff] (!%p2144_p11)   ;;  %v1398_v5 = vld [vmem:[#allocation7 + $0x20] sm:$0xff] (!%p2144_p11)   ;;  %v1399_v6 = vld [vmem:[#allocation7 + $0x28] sm:$0xff] (!%p2144_p11)  }
  0xc1   : > { %s521_s27 = scalar_lea.vmem %s2141_s7, %s1977_s21  ;;  %s524_s24 = scalar_lea.vmem %s2142_s22, %s1977_s21  ;;  %1244 = vmatpush3.bf16.msra.mxu0 (!%p2144_p11), %v1394_v0  ;;  %v1400_v7 = vld [vmem:[#allocation7 + $0x30] sm:$0xff] (!%p2144_p11)   ;;  %v1401_v8 = vld [vmem:[#allocation7 + $0x38] sm:$0xff] (!%p2144_p11)   ;;  %v1402_v9 = vld [vmem:[#allocation2] sm:$0xff] (!%p2144_p11)  }
  0xc2   : > { %1245 = vmatprep.subr.bf16.mxu0 (!%p2144_p11), %v1654_v1 }
  0xc3   : > { %s527_s20 = scalar_lea.vmem %s2143_s11, %s1977_s21 }
  0xc5   : > { %1246 = vmatpush3.bf16.msra.mxu0 (!%p2144_p11), %v1395_v2  ;;  %v1174_v10 = vld [vmem:[%s2145_s26] ss:$0 sm:$0xff] (!%p2144_p11) }
  0xc6   : > { %1247 = vmatprep.subr.bf16.mxu0 (!%p2144_p11), %v1654_v1 }
  0xc9   : > { %1248 = vmatpush3.bf16.msra.mxu0 %v1396_v3 }
  0xca   : > { %1249 = vmatprep.subr.bf16.mxu0 %v1654_v1 }
  0xcd   : > { %1250 = vmatpush3.bf16.msra.mxu0 %v1397_v4 }
  0xce   : > { %1251 = vmatprep.subr.bf16.mxu0 %v1654_v1 }
  0xd1   : > { %1252 = vmatpush3.bf16.msra.mxu0 %v1398_v5 }
  0xd2   : > { %1253 = vmatprep.subr.bf16.mxu0 %v1654_v1 }
  0xd5   : > { %1254 = vmatpush3.bf16.msra.mxu0 %v1399_v6 }
  0xd6   : > { %1255 = vmatprep.subr.bf16.mxu0 %v1654_v1 }
  0xd9   : > { %1256 = vmatpush3.bf16.msra.mxu0 %v1400_v7 }
  0xda   : > { %1257 = vmatprep.subr.bf16.mxu0 %v1654_v1 }
  0xdd   : > { %1258 = vmatpush3.bf16.msra.mxu0 %v1401_v8 }
  0xe0   : > { %1260 = vmatmul.mubr.bf16.vlgmr.msra.gmra.mrb[0].mxu0 %v1402_v9 }
 0x1b3   : > { %v646_v11 = vpop.f32.mrb[0].mxu0 }
 0x1b4   : > { %v647_v12 = vadd.f32 %v1174_v10, %v646_v11  ;;  %v1261_v13 = vpop.f32.mrb[1].mxu0 }
 0x1b5   : > { %v649_v14 = vpop.f32.mrb[2].mxu0 }
 0x1b6   : > { %653 = vst [vmem:[#allocation11] sm:$0xff] %v647_v12  ;;  %v650_v15 = vadd.f32 %v1174_v10, %v649_v14  ;;  %v1262_v16 = vpop.f32.mrb[3].mxu0 }
 0x1b8   : > { %654 = vst [vmem:[#allocation11 + $0x8] sm:$0xff] %v650_v15 }
 0x1b9 PF: > { %v1403_v17 = vld [vmem:[#allocation2] sm:$0xff]   ;;  %v1656_v18 = vmov 0.0   ;;  %v1404_v19 = vld [vmem:[%s440_s23] sm:$0xff]   ;;  %vm1657_vm1 = vmmov 0   ;;  %vm670_vm2 = vcmask 130048   ;;  %v1405_v20 = vld [vmem:[%s1969_s29] sm:$0xff]  }
 0x1ba   : > { %1263 = vmatprep.subr.bf16.mxu0 %v1656_v18  ;;  %1269 = vmatprep.subr.bf16.mxu1 %v1656_v18  ;;  %v1406_v21 = vld [vmem:[%s1969_s29 + $0x8] sm:$0xff]   ;;  %v1407_v22 = vld [vmem:[%s1969_s29 + $0x10] sm:$0xff]   ;;  %v1408_v23 = vld [vmem:[%s1969_s29 + $0x18] sm:$0xff]   ;;  %p1349_p8 = scmp.eq.s32.totalorder %s1735_s17, 2 }
 0x1bb   : > { %1264 = vmatpush3.bf16.msra.mxu0 %v1403_v17  ;;  %1265 = vmatprep.mubr.msk.bf16.mxu0 %vm1657_vm1, %v1656_v18  ;;  %v1409_v24 = vld [vmem:[%s1969_s29 + $0x20] sm:$0xff]   ;;  %v1410_v25 = vld [vmem:[%s1969_s29 + $0x28] sm:$0xff]   ;;  %v1411_v26 = vld [vmem:[%s1969_s29 + $0x30] sm:$0xff]  }
 0x1bc   : > { %1285 = vmatprep.mubr.msk.bf16.mxu1 %vm1657_vm1, %v1656_v18  ;;  %1289 = vmatprep.subr.bf16.mxu0 %v1656_v18  ;;  %v1412_v27 = vld [vmem:[%s1969_s29 + $0x38] sm:$0xff]   ;;  %v1413_v33 = vld [vmem:[%s1995_s12] sm:$0xff]   ;;  %v1414_v34 = vld [vmem:[%s1995_s12 + $0x8] sm:$0xff]  }
 0x1bd   : > { %1270 = vmatpush3.bf16.msra.mxu1 %v1405_v20  ;;  %v1415_v35 = vld [vmem:[%s1995_s12 + $0x10] sm:$0xff]   ;;  %v1416_v36 = vld [vmem:[%s1995_s12 + $0x18] sm:$0xff]   ;;  %v1417_v37 = vld [vmem:[%s1995_s12 + $0x20] sm:$0xff]  }
 0x1be   : > { %1266 = vmatmul.mubr.msk.bf16.vlgmr.msra.gmra.mrb[0].mxu0 %vm670_vm2, %v1404_v19  ;;  %1271 = vmatprep.subr.bf16.mxu1 %v1656_v18  ;;  %v1418_v38 = vld [vmem:[%s1995_s12 + $0x28] sm:$0xff]   ;;  %v1419_v39 = vld [vmem:[%s1995_s12 + $0x30] sm:$0xff]   ;;  %v1420_v40 = vld [vmem:[%s1995_s12 + $0x38] sm:$0xff]  }
 0x1bf   : > { %1305 = vmatprep.mubr.msk.bf16.mxu0 %vm1657_vm1, %v1656_v18  ;;  %1290 = vmatpush3.bf16.msra.mxu0 %v1413_v33  ;;  %v1187_v41 = vld [vmem:[%s518_s3] ss:$0 sm:$0xff] }
 0x1c0   : > { %1291 = vmatprep.subr.bf16.mxu0 %v1656_v18  ;;  %v1196_v9 = vld [vmem:[%s521_s27] ss:$0 sm:$0xff]  ;;  %s1658_s27 = smov [#allocation11]  }
 0x1c1   : > { %1272 = vmatpush3.bf16.msra.mxu1 %v1406_v21  ;;  %v1197_v12 = vld [vmem:[%s524_s24] ss:$0 sm:$0xff]  ;;  %v876_v21 = vld [vmem:[#allocation11] sm:$0xff]  ;;  %s1000_s28 = sshll.u32 %s1658_s27, 4  ;;  %s1001_s28 = int_to_ptr.vmem [resolvable:$true] %s1000_s28 }
 0x1c2   : > { %1273 = vmatprep.subr.bf16.mxu1 %v1656_v18  ;;  %v1198_v20 = vld [vmem:[%s527_s20] ss:$0 sm:$0xff]  ;;  %s1569_s18 = scalar_lea.vmem %s1001_s28, 256  ;;  %p1576_p9 = scmp.lt.s32.totalorder %s1001_s28, %s1001_s28 }
 0x1c3   : > { %1292 = vmatpush3.bf16.msra.mxu0 %v1414_v34  ;;  %p1570_p1 = scmp.ne.s32.totalorder %s1001_s28, %s1569_s18  ;;  %p1577_p12 = scmp.lt.s32.totalorder %s1569_s18, %s1569_s18 }
 0x1c4   : > { %1293 = vmatprep.subr.bf16.mxu0 %v1656_v18 }
 0x1c5   : > { %1274 = vmatpush3.bf16.msra.mxu1 %v1407_v22  ;;  %p1571_p4 = pnand %p1570_p1, %p1349_p8  ;;  %p1578_p13 = por %p1577_p12, %p1576_p9 }
 0x1c6   : > { %1275 = vmatprep.subr.bf16.mxu1 %v1656_v18 }
 0x1c7   : > { %1294 = vmatpush3.bf16.msra.mxu0 %v1415_v35  ;;  %p1572_p5 = pneg %p1571_p4 }
 0x1c8   : > { %1295 = vmatprep.subr.bf16.mxu0 %v1656_v18 }
 0x1c9   : > { %1276 = vmatpush3.bf16.msra.mxu1 %v1408_v23  ;;  %p1579_p6 = pnand %p1578_p13, %p1572_p5 }
 0x1ca   : > { %1277 = vmatprep.subr.bf16.mxu1 %v1656_v18 }
 0x1cb   : > { %1296 = vmatpush3.bf16.msra.mxu0 %v1416_v36 }
 0x1cc   : > { %1297 = vmatprep.subr.bf16.mxu0 %v1656_v18 }
 0x1cd   : > { %1278 = vmatpush3.bf16.msra.mxu1 %v1409_v24 }
 0x1ce   : > { %1279 = vmatprep.subr.bf16.mxu1 %v1656_v18 }
 0x1cf   : > { %1298 = vmatpush3.bf16.msra.mxu0 %v1417_v37 }
 0x1d0   : > { %1299 = vmatprep.subr.bf16.mxu0 %v1656_v18 }
 0x1d1   : > { %1280 = vmatpush3.bf16.msra.mxu1 %v1410_v25  ;;  %v877_v25 = vld [vmem:[#allocation11 + $0x8] sm:$0xff] }
 0x1d2   : > { %1281 = vmatprep.subr.bf16.mxu1 %v1656_v18 }
 0x1d3   : > { %1300 = vmatpush3.bf16.msra.mxu0 %v1418_v38 }
 0x1d4   : > { %1301 = vmatprep.subr.bf16.mxu0 %v1656_v18 }
 0x1d5   : > { %1282 = vmatpush3.bf16.msra.mxu1 %v1411_v26 }
 0x1d6   : > { %1283 = vmatprep.subr.bf16.mxu1 %v1656_v18 }
 0x1d7   : > { %1302 = vmatpush3.bf16.msra.mxu0 %v1419_v39 }
 0x1d8   : > { %1303 = vmatprep.subr.bf16.mxu0 %v1656_v18 }
 0x1d9   : > { %1284 = vmatpush3.bf16.msra.mxu1 %v1412_v27 }
 0x1db   : > { %1304 = vmatpush3.bf16.msra.mxu0 %v1420_v40 }
 0x291   : > { %v708_v28 = vpop.f32.mrb[0].mxu0 }
 0x292   : > { %v1267_v29 = vpop.f32.mrb[1].mxu0 }
 0x293   : > { %v711_v30 = vpop.f32.mrb[2].mxu0 }
 0x294   : > { %v715_v31 = vpack.c.bf16 %v711_v30, %v708_v28  ;;  %v1268_v32 = vpop.f32.mrb[3].mxu0 }
 0x296   : > { %1286 = vmatmul.mubr.bf16.vlgmr.msra.gmra.mrb[0].mxu1 %v715_v31 }
 0x369   : > { %v821_v42 = vpop.f32.mrb[0].mxu1 }
 0x36a   : > { %v822_v43 = vadd.f32 %v1187_v41, %v821_v42  ;;  %v1287_v44 = vpop.f32.mrb[1].mxu1 }
 0x36b   : > { %v824_v45 = vpop.f32.mrb[2].mxu1 }
 0x36c   : > { %v825_v46 = vadd.f32 %v1187_v41, %v824_v45  ;;  %v1288_v47 = vpop.f32.mrb[3].mxu1  ;;  %v836_v48 = vmul.f32 %v822_v43, %v822_v43 }
 0x36e   : > { %v828_v49 = vadd.f32 %v825_v46, %v822_v43  ;;  %v837_v50 = vmul.f32 %v825_v46, %v825_v46 }
 0x370   : > { %v829_v51 = vrot.slane %v828_v49, 4  ;;  %v838_v52 = vadd.f32 %v837_v50, %v836_v48 }
 0x372   : > { %v830_v53 = vadd.f32 %v829_v51, %v828_v49  ;;  %v839_v54 = vrot.slane %v838_v52, 4 }
 0x374   : > { %v831_v55 = vrot.slane %v830_v53, 2  ;;  %v840_v56 = vadd.f32 %v839_v54, %v838_v52 }
 0x376   : > { %v832_v57 = vadd.f32 %v831_v55, %v830_v53  ;;  %v841_v58 = vrot.slane %v840_v56, 2 }
 0x378   : > { %v833_v59 = vrot.slane %v832_v57, 1  ;;  %v842_v60 = vadd.f32 %v841_v58, %v840_v56 }
 0x37a   : > { %v834_v61 = vadd.f32 %v833_v59, %v832_v57  ;;  %v843_v62 = vrot.slane %v842_v60, 1 }
 0x37c   : > { %v835_v63 = vmul.f32 0.0625, %v834_v61  ;;  %v844_v0 = vadd.f32 %v843_v62, %v842_v60 }
 0x37e   : > { %v845_v1 = vmul.f32 0.0625, %v844_v0  ;;  %v846_v2 = vmul.f32 %v835_v63, %v835_v63  ;;  %v849_v3 = vsub.f32 %v822_v43, %v835_v63  ;;  %v850_v4 = vsub.f32 %v825_v46, %v835_v63 }
 0x380   : > { %v847_v5 = vsub.f32 %v845_v1, %v846_v2 }
 0x382   : > { %v848_v6 = vmax.f32 %v847_v5, 0.0 }
 0x384   : > { %v851_v7 = vadd.f32 1e-05, %v848_v6 }
 0x386   : > { %1421 = vrsqrt.f32 %v851_v7 }
 0x390   : > { %v1422_v8 = vpop.eup %1421 }
 0x391   : > { %v853_v10 = vmul.f32 %v1422_v8, %v849_v3  ;;  %v854_v11 = vmul.f32 %v1422_v8, %v850_v4 }
 0x393   : > { %v862_v13 = vmul.f32 %v1196_v9, %v853_v10  ;;  %v863_v14 = vmul.f32 %v1196_v9, %v854_v11 }
 0x395   : > { %v871_v15 = vadd.f32 %v1197_v12, %v862_v13  ;;  %v872_v16 = vadd.f32 %v1197_v12, %v863_v14 }
 0x397   : > { %v873_v17 = vmax.f32 %v871_v15, 0.0  ;;  %v874_v18 = vmax.f32 %v872_v16, 0.0 }
 0x399   : > { %v875_v19 = vpack.c.bf16 %v874_v18, %v873_v17 }
 0x39b   : > { %1306 = vmatmul.mubr.bf16.vlgmr.msra.gmra.mrb[4].mxu0 %v875_v19 }
 0x46e   : > { %v983_v22 = vpop.f32.mrb[4].mxu0 }
 0x46f   : > { %v984_v23 = vadd.f32 %v1198_v20, %v983_v22  ;;  %v1307_v24 = vpop.f32.mrb[5].mxu0 }
 0x470   : > { %v986_v26 = vpop.f32.mrb[6].mxu0 }
 0x471   : > { %v990_v27 = vadd.f32 %v984_v23, %v876_v21  ;;  %v987_v28 = vadd.f32 %v1198_v20, %v986_v26  ;;  %v1308_v29 = vpop.f32.mrb[7].mxu0 }
 0x473   : > { %992 = vst [vmem:[#allocation11] sm:$0xff] %v990_v27  ;;  %v991_v30 = vadd.f32 %v987_v28, %v877_v25 }
 0x475   : > { %993 = vst [vmem:[#allocation11 + $0x8] sm:$0xff] %v991_v30 }
 0x476   : > { %1582 = shalt.err (!%p1579_p6)
}
 0x477   : > { %s2150_s24 = sld [smem:[#allocation27_spill]] }
 0x47d   : > { %s1583_s10 = scalar_lea.hbm %s2150_s24, 256 }
 0x47e   : > { %p1584_p0 = scmp.ne.s32.totalorder %s2150_s24, %s1583_s10  ;;  %p1589_p7 = scmp.lt.u32.totalorder %s1583_s10, %s2150_s24 }
 0x480   : > { %p1585_p10 = pnand %p1584_p0, %p1349_p8 }
 0x482   : > { %p1586_p3 = pneg %p1585_p10 }
 0x484   : > { %p1591_p2 = pnand %p1589_p7, %p1586_p3 }
 0x486   : > { %1594 = shalt.err (!%p1591_p2)
}
 0x487   : > { %s1659_s13 = smov 128   ;;  %s1660_s25 = smov 8  }
 0x488   : > { %1324 = dma.vmem_to_hbm [thread:$0]  (%p1349_p8), %s1001_s28, 256, %s2150_s24, [#allocation4], %s1659_s13, %s1659_s13, %s1660_s25  }
 0x489   : > { %1628 = dma.done.wait (%p1349_p8), [#allocation4], 256  }
 0x48a   : > { %1630 = vsyncadd (%p1349_p8), [#allocation4], 4294967040 }
 0x48b PF: > { %s2151_s16 = sld [smem:[#allocation18_spill]]  ;;  %s2152_s23 = sld [smem:[#allocation17_spill]] }
 0x48c   : > { %s2153_s15 = sld [smem:[#allocation19_spill]]  ;;  %s2154_s13 = smov %s1637_s14 }
 0x491   : > { %p25_p11 = scmp.ge.s32.totalorder %s2151_s16, 5   ;;  %s2155_s14 = smov %s2152_s23 }
 0x493   :  { %27 = sbr.rel (!%p25_p11) target bundleno = 16 (0x10), region = 146 }
 0x49a   :  { %1016 = vsyncpa [#allocation3], 1 }
 0x49b   :  { %1018 = vsyncpa [#allocation3 + $0x1], 1 }
 0x49c   :  { %1019 = vsyncpa [#allocation6], 1 }
 0x49d   :  { %1021 = vsyncpa [#allocation6 + $0x1], 1 }
 0x49e   :  { %1022 = vsyncpa [#allocation9], 1 }
 0x49f   :  { %1024 = vsyncpa [#allocation9 + $0x1], 1 }
 0x4a0   :  { %1025 = vsyncpa [#allocation4], 1 }
 0x4a1   :  { %1027 = vsyncpa [#allocation4 + $0x1], 1 }

</bundles_post_ra>
